<compile_context>
chip_gen: v7x
topology: tpu7x:2x2x1
jax: 0.10.0
libtpu: 0.0.40
codegen_flags: <defaults>
</compile_context>

<pallas_src>
import jax
import jax.numpy as jnp
from jax.experimental import pallas as pl
from jax.experimental.pallas import tpu as pltpu

# ---------------- sizes ----------------
BATCH = 4            # graphs per call
N_NODES = 8          # atoms / nodes per graph
N_EDGES = 16         # edges per graph
N_SPECIES = 5        # embedding vocabulary
EDGE_DIM = 16        # raw edge_attr (RBF) dimension
HIDDEN = 32          # hidden feature width
GRAPHS_PER_BLOCK = 2 # 2 grid steps for BATCH=4 -> both v7x TCs get work


def _mxu(a, b):
    # bf16 MXU operands, f32 accumulation.  astype() is a no-op on operands the
    # wrapper already pre-cast to bf16 (weights, one-hots, edge_attr).
    return jnp.dot(a.astype(jnp.bfloat16), b.astype(jnp.bfloat16),
                   preferred_element_type=jnp.float32)


def _et_kernel(
    # per-block data (leading block dim squeezed away by BlockSpec)
    species_oh_ref, src_oh_ref, dst_oh_ref, eattr_ref, evec_ref,
    # resident parameters (constant index maps)
    W_embed_ref, W_ea_ref, W_block_ref, W_slab_ref, Wd_ref, vslab_ref,
    # packed output [G*N, 4] = [scalar, vx, vy, vz]
    out_ref,
):
    silu = jax.nn.silu
    GN = species_oh_ref.shape[0]          # graphs_per_block * N
    GE = eattr_ref.shape[0]               # graphs_per_block * E
    H = W_embed_ref.shape[1]

    # ---- f32 bias / row slab (tile-aligned sublane slices) ----
    b_ea  = vslab_ref[0:1, :]
    W_len = vslab_ref[1:2, :]
    b_len = vslab_ref[2:3, :]
    b1    = vslab_ref[3:4, :]
    bg    = vslab_ref[4:5, :]
    bs1   = vslab_ref[5:6, :]
    b_out = vslab_ref[6:7, 0:4]           # [1, 4] = [bs2, 0, 0, 0]

    ev = evec_ref[...]                    # [GE, 3] f32

    # ---------------- encoder ----------------
    h0 = _mxu(species_oh_ref[...], W_embed_ref[...])               # [GN, H]
    ea = silu(_mxu(eattr_ref[...], W_ea_ref[...]) + b_ea)          # [GE, H]

    # lane-stacked edge slab [0 | x*ea | y*ea | z*ea] -> [GE, 4H] (128 lanes dense)
    m4 = jnp.concatenate(
        [jnp.zeros((GE, H), jnp.float32),
         ev[:, 0:1] * ea, ev[:, 1:2] * ea, ev[:, 2:3] * ea], axis=1)
    state = (jnp.concatenate([h0, jnp.zeros((GN, 3 * H), jnp.float32)], axis=1)
             + _mxu(dst_oh_ref[...], m4))                           # [GN, 4H] = [h | vx | vy | vz]

    # ---------------- processor (one interaction layer) ----------------
    # |edge_vec| from explicit column slices (no lane-axis reduce)
    edge_len = jnp.sqrt(ev[:, 0:1] ** 2 + ev[:, 1:2] ** 2 + ev[:, 2:3] ** 2)  # [GE, 1]
    phi = silu(edge_len * W_len + b_len)                            # [GE, H]

    gathered = _mxu(src_oh_ref[...], state)                         # [GE, 4H] (h + 3 planes, 1 push)
    h_src = gathered[:, 0:H]
    msg = silu(h_src * ea * phi)                                    # [GE, H]
    gate = silu(_mxu(msg, W_slab_ref[0:H, :]) + bg)                 # [GE, H]
    msg4 = jnp.concatenate(
        [msg,
         gathered[:, H:2 * H] * gate,
         gathered[:, 2 * H:3 * H] * gate,
         gathered[:, 3 * H:4 * H] * gate], axis=1)                  # [GE, 4H]

    agg = _mxu(dst_oh_ref[...], msg4)                               # [GN, 4H] (4 scatters, 1 push)
    delta = _mxu(agg, W_block_ref[...])                             # [GN, 4H] blockdiag(W1,Wv,Wv,Wv)
    h = state[:, 0:H] + silu(delta[:, 0:H] + b1)                    # [GN, H]
    v = state[:, H:] + delta[:, H:]                                 # [GN, 3H]

    # ---------------- decoder (gated equivariant output) ----------------
    vx, vy, vz = v[:, 0:H], v[:, H:2 * H], v[:, 2 * H:3 * H]
    v_norm2 = vx * vx + vy * vy + vz * vz                           # [GN, H] invariant
    hv = jnp.concatenate([h, v_norm2], axis=1)                      # [GN, 2H]
    hidden = silu(_mxu(hv, W_slab_ref[H:3 * H, :]) + bs1)           # [GN, H]

    # one [GN,4H] x [4H,4] push produces all four output columns directly
    x4 = jnp.concatenate([hidden, v], axis=1)                       # [GN, 4H]
    out_ref[...] = _mxu(x4, Wd_ref[...]) + b_out                    # [GN, 4]


def make_params(key):
    ks = jax.random.split(key, 16)

    def w(k, shape, scale=0.1):
        return (scale * jax.random.normal(k, shape)).astype(jnp.float32)

    H, D, S = HIDDEN, EDGE_DIM, N_SPECIES
    return dict(
        W_embed=w(ks[0], (S, H)),
        W_ea=w(ks[1], (D, H)), b_ea=w(ks[2], (1, H)),
        W_len=w(ks[3], (1, H)), b_len=w(ks[4], (1, H)),
        W1=w(ks[5], (H, H)), b1=w(ks[6], (1, H)),
        Wv=w(ks[7], (H, H)),
        Wg=w(ks[8], (H, H)), bg=w(ks[9], (1, H)),
        Ws1=w(ks[10], (2 * H, H)), bs1=w(ks[11], (1, H)),
        Ws2=w(ks[12], (H, 1)), bs2=w(ks[13], (1, 1)),
        Wv_dec=w(ks[14], (H, 1)),
    )


def equivariant_transformer(species, edge_index, edge_attr, edge_vec, params):
    """species: [B,N] int32, edge_index: [B,2,E] int32, edge_attr: [B,E,D] f32,
    edge_vec: [B,E,3] f32  ->  (out_s [B,N,1] f32, out_v [B,N,3] f32)."""
    B, N = species.shape
    E = edge_index.shape[2]
    H = HIDDEN
    G = GRAPHS_PER_BLOCK
    assert B % G == 0
    NB = B // G
    GN, GE = G * N, G * E

    # --- glue: stack G graphs per block along node/edge axes; bf16 one-hots ---
    species_oh = jax.nn.one_hot(species, N_SPECIES, dtype=jnp.bfloat16).reshape(NB, GN, N_SPECIES)
    node_off = ((jnp.arange(B, dtype=jnp.int32) % G) * N)[:, None]              # [B, 1]
    src = edge_index[:, 0, :] + node_off                                        # [B, E] in [0, GN)
    dst = edge_index[:, 1, :] + node_off
    src_oh = jax.nn.one_hot(src, GN, dtype=jnp.bfloat16).reshape(NB, GE, GN)    # gather  [GE, GN]
    dst_oh = jnp.swapaxes(
        jax.nn.one_hot(dst, GN, dtype=jnp.bfloat16).reshape(NB, GE, GN), 1, 2)  # scatter [GN, GE]
    edge_attr_b = edge_attr.astype(jnp.bfloat16).reshape(NB, GE, EDGE_DIM)
    edge_vec_b = edge_vec.astype(jnp.float32).reshape(NB, GE, 3)

    # --- resident weight slabs, pre-cast to bf16 once ---
    Z = jnp.zeros((H, H), jnp.float32)
    W1, Wv = params["W1"], params["Wv"]
    W_block = jnp.block([[W1, Z, Z, Z],
                         [Z, Wv, Z, Z],
                         [Z, Z, Wv, Z],
                         [Z, Z, Z, Wv]]).astype(jnp.bfloat16)                   # [4H, 4H]
    W_slab = jnp.concatenate([params["Wg"], params["Ws1"]], axis=0).astype(jnp.bfloat16)  # [3H, H]
    Wd = jnp.zeros((4 * H, 4), jnp.float32)
    Wd = Wd.at[0 * H:1 * H, 0:1].set(params["Ws2"])
    Wd = Wd.at[1 * H:2 * H, 1:2].set(params["Wv_dec"])
    Wd = Wd.at[2 * H:3 * H, 2:3].set(params["Wv_dec"])
    Wd = Wd.at[3 * H:4 * H, 3:4].set(params["Wv_dec"])
    Wd = Wd.astype(jnp.bfloat16)                                                # [4H, 4]
    W_embed = params["W_embed"].astype(jnp.bfloat16)
    W_ea = params["W_ea"].astype(jnp.bfloat16)

    b_out_row = jnp.zeros((1, H), jnp.float32).at[0, 0].set(params["bs2"][0, 0])
    vec_slab = jnp.concatenate(
        [params["b_ea"], params["W_len"], params["b_len"], params["b1"],
         params["bg"], params["bs1"], b_out_row, jnp.zeros((1, H), jnp.float32)], axis=0)  # [8, H] f32

    def dspec(r, c):   # per-block data, block dim squeezed
        return pl.BlockSpec((None, r, c), lambda b: (b, 0, 0))

    def wspec(r, c):   # resident parameter, constant index map
        return pl.BlockSpec((r, c), lambda b: (0, 0))

    out_packed = pl.pallas_call(
        _et_kernel,
        grid=(NB,),
        in_specs=[
            dspec(GN, N_SPECIES),        # species_oh
            dspec(GE, GN),               # src_oh (gather)
            dspec(GN, GE),               # dst_oh (scatter)
            dspec(GE, EDGE_DIM),         # edge_attr
            dspec(GE, 3),                # edge_vec
            wspec(N_SPECIES, H),         # W_embed
            wspec(EDGE_DIM, H),          # W_ea
            wspec(4 * H, 4 * H),         # W_block (blockdiag W1,Wv,Wv,Wv)
            wspec(3 * H, H),             # W_slab  (Wg ; Ws1)
            wspec(4 * H, 4),             # Wd (block-structured decoder)
            wspec(8, H),                 # vec_slab (biases)
        ],
        out_specs=dspec(GN, 4),
        out_shape=jax.ShapeDtypeStruct((NB, GN, 4), jnp.float32),
        compiler_params=pltpu.CompilerParams(dimension_semantics=("parallel",)),
    )(species_oh, src_oh, dst_oh, edge_attr_b, edge_vec_b,
      W_embed, W_ea, W_block, W_slab, Wd, vec_slab)

    out = out_packed.reshape(B, N, 4)
    return out[..., 0:1], out[..., 1:4]


def _reference(species, edge_index, edge_attr, edge_vec, p):
    """Pure-JAX single-graph reference of the same synthetic architecture."""
    silu = jax.nn.silu
    src, dst = edge_index[0], edge_index[1]
    h = p["W_embed"][species]
    ea = silu(edge_attr @ p["W_ea"] + p["b_ea"])
    v = jnp.zeros((species.shape[0], 3, HIDDEN), jnp.float32)
    v = v.at[dst].add(edge_vec[:, :, None] * ea[:, None, :])
    edge_len = jnp.linalg.norm(edge_vec, axis=1, keepdims=True)
    phi = silu(edge_len * p["W_len"] + p["b_len"])
    msg = silu(h[src] * ea * phi)
    h_agg = jnp.zeros_like(h).at[dst].add(msg)
    h = h + silu(h_agg @ p["W1"] + p["b1"])
    gate = silu(msg @ p["Wg"] + p["bg"])
    v_agg = jnp.zeros_like(v).at[dst].add(v[src] * gate[:, None, :])
    v = v + jnp.einsum("ncp,pq->ncq", v_agg, p["Wv"])
    v_norm2 = jnp.sum(v * v, axis=1)
    hidden = silu(jnp.concatenate([h, v_norm2], axis=1) @ p["Ws1"] + p["bs1"])
    out_s = hidden @ p["Ws2"] + p["bs2"]
    out_v = jnp.einsum("ncp,po->nc", v, p["Wv_dec"])
    return out_s, out_v


if __name__ == "__main__":
    key = jax.random.PRNGKey(0)
    k_sp, k_ei, k_ea, k_ev, k_par = jax.random.split(key, 5)

    B = BATCH
    species = jax.random.randint(k_sp, (B, N_NODES), 0, N_SPECIES, dtype=jnp.int32)
    edge_index = jax.random.randint(k_ei, (B, 2, N_EDGES), 0, N_NODES, dtype=jnp.int32)
    edge_attr = jax.random.normal(k_ea, (B, N_EDGES, EDGE_DIM), dtype=jnp.float32)
    edge_vec = jax.random.normal(k_ev, (B, N_EDGES, 3), dtype=jnp.float32)
    params = make_params(k_par)

    out_s, out_v = equivariant_transformer(species, edge_index, edge_attr, edge_vec, params)
    jax.block_until_ready((out_s, out_v))

    # check vs pure-JAX f32 reference (bf16 MXU operands + f32 accumulation)
    ref_s, ref_v = jax.vmap(lambda s, ei, ea, ev: _reference(s, ei, ea, ev, params))(
        species, edge_index, edge_attr, edge_vec)
    assert out_s.shape == (B, N_NODES, 1) and out_v.shape == (B, N_NODES, 3)
    assert jnp.allclose(out_s, ref_s, rtol=2e-2, atol=2e-2), float(jnp.max(jnp.abs(out_s - ref_s)))
    assert jnp.allclose(out_v, ref_v, rtol=2e-2, atol=2e-2), float(jnp.max(jnp.abs(out_v - ref_v)))

    print("KERNEL_OK")
</pallas_src>

<mosaic_0001>
module attributes {stable_mosaic.version = 11 : i64} {
  func.func @_et_kernel(%arg0: i32, %arg1: memref<1x16x5xbf16, #tpu.memory_space<vmem>>, %arg2: memref<1x32x16xbf16, #tpu.memory_space<vmem>>, %arg3: memref<1x16x32xbf16, #tpu.memory_space<vmem>>, %arg4: memref<1x32x16xbf16, #tpu.memory_space<vmem>>, %arg5: memref<1x32x3xf32, #tpu.memory_space<vmem>>, %arg6: memref<5x32xbf16, #tpu.memory_space<vmem>>, %arg7: memref<16x32xbf16, #tpu.memory_space<vmem>>, %arg8: memref<128x128xbf16, #tpu.memory_space<vmem>>, %arg9: memref<96x32xbf16, #tpu.memory_space<vmem>>, %arg10: memref<128x4xbf16, #tpu.memory_space<vmem>>, %arg11: memref<8x32xf32, #tpu.memory_space<vmem>>, %arg12: memref<1x16x4xf32, #tpu.memory_space<vmem>>) attributes {dimension_semantics = [#tpu.dimension_semantics<parallel>], iteration_bounds = array<i64: 2>, scalar_prefetch = 0 : i64, scratch_operands = 0 : i64, tpu.core_type = #tpu.core_type<tc>, window_params = [{transform_indices = @transform_0, window_bounds = array<i64: 1, 16, 5>}, {transform_indices = @transform_1, window_bounds = array<i64: 1, 32, 16>}, {transform_indices = @transform_2, window_bounds = array<i64: 1, 16, 32>}, {transform_indices = @transform_3, window_bounds = array<i64: 1, 32, 16>}, {transform_indices = @transform_4, window_bounds = array<i64: 1, 32, 3>}, {pipeline_mode = #tpu.pipeline_mode<synchronous>, transform_indices = @transform_5, window_bounds = array<i64: 5, 32>}, {pipeline_mode = #tpu.pipeline_mode<synchronous>, transform_indices = @transform_6, window_bounds = array<i64: 16, 32>}, {pipeline_mode = #tpu.pipeline_mode<synchronous>, transform_indices = @transform_7, window_bounds = array<i64: 128, 128>}, {pipeline_mode = #tpu.pipeline_mode<synchronous>, transform_indices = @transform_8, window_bounds = array<i64: 96, 32>}, {pipeline_mode = #tpu.pipeline_mode<synchronous>, transform_indices = @transform_9, window_bounds = array<i64: 128, 4>}, {pipeline_mode = #tpu.pipeline_mode<synchronous>, transform_indices = @transform_10, window_bounds = array<i64: 8, 32>}, {transform_indices = @transform_11, window_bounds = array<i64: 1, 16, 4>}]} {
    %c0 = arith.constant 0 : index
    %c0_0 = arith.constant 0 : index
    %0 = vector.load %arg11[%c0, %c0_0] : memref<8x32xf32, #tpu.memory_space<vmem>>, vector<1x32xf32>
    %c1 = arith.constant 1 : index
    %c0_1 = arith.constant 0 : index
    %1 = vector.load %arg11[%c1, %c0_1] : memref<8x32xf32, #tpu.memory_space<vmem>>, vector<1x32xf32>
    %c2 = arith.constant 2 : index
    %c0_2 = arith.constant 0 : index
    %2 = vector.load %arg11[%c2, %c0_2] : memref<8x32xf32, #tpu.memory_space<vmem>>, vector<1x32xf32>
    %c3 = arith.constant 3 : index
    %c0_3 = arith.constant 0 : index
    %3 = vector.load %arg11[%c3, %c0_3] : memref<8x32xf32, #tpu.memory_space<vmem>>, vector<1x32xf32>
    %c4 = arith.constant 4 : index
    %c0_4 = arith.constant 0 : index
    %4 = vector.load %arg11[%c4, %c0_4] : memref<8x32xf32, #tpu.memory_space<vmem>>, vector<1x32xf32>
    %c5 = arith.constant 5 : index
    %c0_5 = arith.constant 0 : index
    %5 = vector.load %arg11[%c5, %c0_5] : memref<8x32xf32, #tpu.memory_space<vmem>>, vector<1x32xf32>
    %c6 = arith.constant 6 : index
    %c0_6 = arith.constant 0 : index
    %6 = vector.load %arg11[%c6, %c0_6] : memref<8x32xf32, #tpu.memory_space<vmem>>, vector<1x4xf32>
    %c0_7 = arith.constant 0 : index
    %c0_8 = arith.constant 0 : index
    %c0_9 = arith.constant 0 : index
    %7 = vector.load %arg5[%c0_7, %c0_8, %c0_9] : memref<1x32x3xf32, #tpu.memory_space<vmem>>, vector<1x32x3xf32>
    %8 = vector.shape_cast %7 : vector<1x32x3xf32> to vector<32x3xf32>
    %c0_10 = arith.constant 0 : index
    %c0_11 = arith.constant 0 : index
    %c0_12 = arith.constant 0 : index
    %9 = vector.load %arg1[%c0_10, %c0_11, %c0_12] : memref<1x16x5xbf16, #tpu.memory_space<vmem>>, vector<1x16x5xbf16>
    %10 = vector.shape_cast %9 : vector<1x16x5xbf16> to vector<16x5xbf16>
    %c0_13 = arith.constant 0 : index
    %c0_14 = arith.constant 0 : index
    %11 = vector.load %arg6[%c0_13, %c0_14] : memref<5x32xbf16, #tpu.memory_space<vmem>>, vector<5x32xbf16>
    %cst = arith.constant dense<0.000000e+00> : vector<16x32xf32>
    %12 = tpu.matmul %10, %11, %cst {dimension_numbers = #tpu.dot_dimension_numbers<[1], [0], [0], [1], [0, 0, 1, 1], [], []>} : vector<16x5xbf16>, vector<5x32xbf16>, vector<16x32xf32> -> vector<16x32xf32>
    %c0_15 = arith.constant 0 : index
    %c0_16 = arith.constant 0 : index
    %c0_17 = arith.constant 0 : index
    %13 = vector.load %arg4[%c0_15, %c0_16, %c0_17] : memref<1x32x16xbf16, #tpu.memory_space<vmem>>, vector<1x32x16xbf16>
    %14 = vector.shape_cast %13 : vector<1x32x16xbf16> to vector<32x16xbf16>
    %c0_18 = arith.constant 0 : index
    %c0_19 = arith.constant 0 : index
    %15 = vector.load %arg7[%c0_18, %c0_19] : memref<16x32xbf16, #tpu.memory_space<vmem>>, vector<16x32xbf16>
    %cst_20 = arith.constant dense<0.000000e+00> : vector<32x32xf32>
    %16 = tpu.matmul %14, %15, %cst_20 {dimension_numbers = #tpu.dot_dimension_numbers<[1], [0], [0], [1], [0, 0, 1, 1], [], []>} : vector<32x16xbf16>, vector<16x32xbf16>, vector<32x32xf32> -> vector<32x32xf32>
    %17 = vector.broadcast %0 : vector<1x32xf32> to vector<32x32xf32>
    %18 = arith.addf %16, %17 : vector<32x32xf32>
    %19 = arith.negf %18 : vector<32x32xf32>
    %20 = math.exp %19 : vector<32x32xf32>
    %cst_21 = arith.constant 1.000000e+00 : f32
    %21 = vector.broadcast %cst_21 : f32 to vector<32x32xf32>
    %22 = arith.addf %21, %20 : vector<32x32xf32>
    %23 = arith.divf %21, %22 : vector<32x32xf32>
    %24 = arith.mulf %18, %23 : vector<32x32xf32>
    %cst_22 = arith.constant 0.000000e+00 : f32
    %25 = vector.broadcast %cst_22 : f32 to vector<32x32xf32>
    %26 = vector.extract_strided_slice %8 {offsets = [0, 0], sizes = [32, 1], strides = [1, 1]} : vector<32x3xf32> to vector<32x1xf32>
    %27 = vector.broadcast %26 : vector<32x1xf32> to vector<32x32xf32>
    %28 = arith.mulf %27, %24 : vector<32x32xf32>
    %29 = vector.extract_strided_slice %8 {offsets = [0, 1], sizes = [32, 1], strides = [1, 1]} : vector<32x3xf32> to vector<32x1xf32>
    %30 = vector.broadcast %29 : vector<32x1xf32> to vector<32x32xf32>
    %31 = arith.mulf %30, %24 : vector<32x32xf32>
    %32 = vector.extract_strided_slice %8 {offsets = [0, 2], sizes = [32, 1], strides = [1, 1]} : vector<32x3xf32> to vector<32x1xf32>
    %33 = vector.broadcast %32 : vector<32x1xf32> to vector<32x32xf32>
    %34 = arith.mulf %33, %24 : vector<32x32xf32>
    %35 = tpu.concatenate %25, %28, %31, %34 in 1 : vector<32x32xf32>, vector<32x32xf32>, vector<32x32xf32>, vector<32x32xf32> -> vector<32x128xf32>
    %cst_23 = arith.constant 0.000000e+00 : f32
    %36 = vector.broadcast %cst_23 : f32 to vector<16x96xf32>
    %37 = tpu.concatenate %12, %36 in 1 : vector<16x32xf32>, vector<16x96xf32> -> vector<16x128xf32>
    %c0_24 = arith.constant 0 : index
    %c0_25 = arith.constant 0 : index
    %c0_26 = arith.constant 0 : index
    %38 = vector.load %arg3[%c0_24, %c0_25, %c0_26] : memref<1x16x32xbf16, #tpu.memory_space<vmem>>, vector<1x16x32xbf16>
    %39 = vector.shape_cast %38 : vector<1x16x32xbf16> to vector<16x32xbf16>
    %40 = arith.truncf %35 : vector<32x128xf32> to vector<32x128xbf16>
    %cst_27 = arith.constant dense<0.000000e+00> : vector<16x128xf32>
    %41 = tpu.matmul %39, %40, %cst_27 {dimension_numbers = #tpu.dot_dimension_numbers<[1], [0], [0], [1], [0, 0, 1, 1], [], []>} : vector<16x32xbf16>, vector<32x128xbf16>, vector<16x128xf32> -> vector<16x128xf32>
    %42 = arith.addf %37, %41 : vector<16x128xf32>
    %43 = vector.extract_strided_slice %8 {offsets = [0, 0], sizes = [32, 1], strides = [1, 1]} : vector<32x3xf32> to vector<32x1xf32>
    %44 = arith.mulf %43, %43 : vector<32x1xf32>
    %45 = vector.extract_strided_slice %8 {offsets = [0, 1], sizes = [32, 1], strides = [1, 1]} : vector<32x3xf32> to vector<32x1xf32>
    %46 = arith.mulf %45, %45 : vector<32x1xf32>
    %47 = arith.addf %44, %46 : vector<32x1xf32>
    %48 = vector.extract_strided_slice %8 {offsets = [0, 2], sizes = [32, 1], strides = [1, 1]} : vector<32x3xf32> to vector<32x1xf32>
    %49 = arith.mulf %48, %48 : vector<32x1xf32>
    %50 = arith.addf %47, %49 : vector<32x1xf32>
    %51 = math.sqrt %50 : vector<32x1xf32>
    %52 = vector.broadcast %51 : vector<32x1xf32> to vector<32x32xf32>
    %53 = vector.broadcast %1 : vector<1x32xf32> to vector<32x32xf32>
    %54 = arith.mulf %52, %53 : vector<32x32xf32>
    %55 = vector.broadcast %2 : vector<1x32xf32> to vector<32x32xf32>
    %56 = arith.addf %54, %55 : vector<32x32xf32>
    %57 = arith.negf %56 : vector<32x32xf32>
    %58 = math.exp %57 : vector<32x32xf32>
    %cst_28 = arith.constant 1.000000e+00 : f32
    %59 = vector.broadcast %cst_28 : f32 to vector<32x32xf32>
    %60 = arith.addf %59, %58 : vector<32x32xf32>
    %61 = arith.divf %59, %60 : vector<32x32xf32>
    %62 = arith.mulf %56, %61 : vector<32x32xf32>
    %c0_29 = arith.constant 0 : index
    %c0_30 = arith.constant 0 : index
    %c0_31 = arith.constant 0 : index
    %63 = vector.load %arg2[%c0_29, %c0_30, %c0_31] : memref<1x32x16xbf16, #tpu.memory_space<vmem>>, vector<1x32x16xbf16>
    %64 = vector.shape_cast %63 : vector<1x32x16xbf16> to vector<32x16xbf16>
    %65 = arith.truncf %42 : vector<16x128xf32> to vector<16x128xbf16>
    %cst_32 = arith.constant dense<0.000000e+00> : vector<32x128xf32>
    %66 = tpu.matmul %64, %65, %cst_32 {dimension_numbers = #tpu.dot_dimension_numbers<[1], [0], [0], [1], [0, 0, 1, 1], [], []>} : vector<32x16xbf16>, vector<16x128xbf16>, vector<32x128xf32> -> vector<32x128xf32>
    %67 = vector.extract_strided_slice %66 {offsets = [0, 0], sizes = [32, 32], strides = [1, 1]} : vector<32x128xf32> to vector<32x32xf32>
    %68 = arith.mulf %67, %24 : vector<32x32xf32>
    %69 = arith.mulf %68, %62 : vector<32x32xf32>
    %70 = arith.negf %69 : vector<32x32xf32>
    %71 = math.exp %70 : vector<32x32xf32>
    %cst_33 = arith.constant 1.000000e+00 : f32
    %72 = vector.broadcast %cst_33 : f32 to vector<32x32xf32>
    %73 = arith.addf %72, %71 : vector<32x32xf32>
    %74 = arith.divf %72, %73 : vector<32x32xf32>
    %75 = arith.mulf %69, %74 : vector<32x32xf32>
    %c0_34 = arith.constant 0 : index
    %c0_35 = arith.constant 0 : index
    %76 = vector.load %arg9[%c0_34, %c0_35] : memref<96x32xbf16, #tpu.memory_space<vmem>>, vector<32x32xbf16>
    %77 = arith.truncf %75 : vector<32x32xf32> to vector<32x32xbf16>
    %cst_36 = arith.constant dense<0.000000e+00> : vector<32x32xf32>
    %78 = tpu.matmul %77, %76, %cst_36 {dimension_numbers = #tpu.dot_dimension_numbers<[1], [0], [0], [1], [0, 0, 1, 1], [], []>} : vector<32x32xbf16>, vector<32x32xbf16>, vector<32x32xf32> -> vector<32x32xf32>
    %79 = vector.broadcast %4 : vector<1x32xf32> to vector<32x32xf32>
    %80 = arith.addf %78, %79 : vector<32x32xf32>
    %81 = arith.negf %80 : vector<32x32xf32>
    %82 = math.exp %81 : vector<32x32xf32>
    %cst_37 = arith.constant 1.000000e+00 : f32
    %83 = vector.broadcast %cst_37 : f32 to vector<32x32xf32>
    %84 = arith.addf %83, %82 : vector<32x32xf32>
    %85 = arith.divf %83, %84 : vector<32x32xf32>
    %86 = arith.mulf %80, %85 : vector<32x32xf32>
    %87 = vector.extract_strided_slice %66 {offsets = [0, 32], sizes = [32, 32], strides = [1, 1]} : vector<32x128xf32> to vector<32x32xf32>
    %88 = arith.mulf %87, %86 : vector<32x32xf32>
    %89 = vector.extract_strided_slice %66 {offsets = [0, 64], sizes = [32, 32], strides = [1, 1]} : vector<32x128xf32> to vector<32x32xf32>
    %90 = arith.mulf %89, %86 : vector<32x32xf32>
    %91 = vector.extract_strided_slice %66 {offsets = [0, 96], sizes = [32, 32], strides = [1, 1]} : vector<32x128xf32> to vector<32x32xf32>
    %92 = arith.mulf %91, %86 : vector<32x32xf32>
    %93 = tpu.concatenate %75, %88, %90, %92 in 1 : vector<32x32xf32>, vector<32x32xf32>, vector<32x32xf32>, vector<32x32xf32> -> vector<32x128xf32>
    %c0_38 = arith.constant 0 : index
    %c0_39 = arith.constant 0 : index
    %c0_40 = arith.constant 0 : index
    %94 = vector.load %arg3[%c0_38, %c0_39, %c0_40] : memref<1x16x32xbf16, #tpu.memory_space<vmem>>, vector<1x16x32xbf16>
    %95 = vector.shape_cast %94 : vector<1x16x32xbf16> to vector<16x32xbf16>
    %96 = arith.truncf %93 : vector<32x128xf32> to vector<32x128xbf16>
    %cst_41 = arith.constant dense<0.000000e+00> : vector<16x128xf32>
    %97 = tpu.matmul %95, %96, %cst_41 {dimension_numbers = #tpu.dot_dimension_numbers<[1], [0], [0], [1], [0, 0, 1, 1], [], []>} : vector<16x32xbf16>, vector<32x128xbf16>, vector<16x128xf32> -> vector<16x128xf32>
    %c0_42 = arith.constant 0 : index
    %c0_43 = arith.constant 0 : index
    %98 = vector.load %arg8[%c0_42, %c0_43] : memref<128x128xbf16, #tpu.memory_space<vmem>>, vector<128x128xbf16>
    %99 = arith.truncf %97 : vector<16x128xf32> to vector<16x128xbf16>
    %cst_44 = arith.constant dense<0.000000e+00> : vector<16x128xf32>
    %100 = tpu.matmul %99, %98, %cst_44 {dimension_numbers = #tpu.dot_dimension_numbers<[1], [0], [0], [1], [0, 0, 1, 1], [], []>} : vector<16x128xbf16>, vector<128x128xbf16>, vector<16x128xf32> -> vector<16x128xf32>
    %101 = vector.extract_strided_slice %42 {offsets = [0, 0], sizes = [16, 32], strides = [1, 1]} : vector<16x128xf32> to vector<16x32xf32>
    %102 = vector.extract_strided_slice %100 {offsets = [0, 0], sizes = [16, 32], strides = [1, 1]} : vector<16x128xf32> to vector<16x32xf32>
    %103 = vector.broadcast %3 : vector<1x32xf32> to vector<16x32xf32>
    %104 = arith.addf %102, %103 : vector<16x32xf32>
    %105 = arith.negf %104 : vector<16x32xf32>
    %106 = math.exp %105 : vector<16x32xf32>
    %cst_45 = arith.constant 1.000000e+00 : f32
    %107 = vector.broadcast %cst_45 : f32 to vector<16x32xf32>
    %108 = arith.addf %107, %106 : vector<16x32xf32>
    %109 = arith.divf %107, %108 : vector<16x32xf32>
    %110 = arith.mulf %104, %109 : vector<16x32xf32>
    %111 = arith.addf %101, %110 : vector<16x32xf32>
    %112 = vector.extract_strided_slice %42 {offsets = [0, 32], sizes = [16, 96], strides = [1, 1]} : vector<16x128xf32> to vector<16x96xf32>
    %113 = vector.extract_strided_slice %100 {offsets = [0, 32], sizes = [16, 96], strides = [1, 1]} : vector<16x128xf32> to vector<16x96xf32>
    %114 = arith.addf %112, %113 : vector<16x96xf32>
    %115 = vector.extract_strided_slice %114 {offsets = [0, 0], sizes = [16, 32], strides = [1, 1]} : vector<16x96xf32> to vector<16x32xf32>
    %116 = vector.extract_strided_slice %114 {offsets = [0, 32], sizes = [16, 32], strides = [1, 1]} : vector<16x96xf32> to vector<16x32xf32>
    %117 = vector.extract_strided_slice %114 {offsets = [0, 64], sizes = [16, 32], strides = [1, 1]} : vector<16x96xf32> to vector<16x32xf32>
    %118 = arith.mulf %115, %115 : vector<16x32xf32>
    %119 = arith.mulf %116, %116 : vector<16x32xf32>
    %120 = arith.addf %118, %119 : vector<16x32xf32>
    %121 = arith.mulf %117, %117 : vector<16x32xf32>
    %122 = arith.addf %120, %121 : vector<16x32xf32>
    %123 = tpu.concatenate %111, %122 in 1 : vector<16x32xf32>, vector<16x32xf32> -> vector<16x64xf32>
    %c32 = arith.constant 32 : index
    %c0_46 = arith.constant 0 : index
    %124 = vector.load %arg9[%c32, %c0_46] : memref<96x32xbf16, #tpu.memory_space<vmem>>, vector<64x32xbf16>
    %125 = arith.truncf %123 : vector<16x64xf32> to vector<16x64xbf16>
    %cst_47 = arith.constant dense<0.000000e+00> : vector<16x32xf32>
    %126 = tpu.matmul %125, %124, %cst_47 {dimension_numbers = #tpu.dot_dimension_numbers<[1], [0], [0], [1], [0, 0, 1, 1], [], []>} : vector<16x64xbf16>, vector<64x32xbf16>, vector<16x32xf32> -> vector<16x32xf32>
    %127 = vector.broadcast %5 : vector<1x32xf32> to vector<16x32xf32>
    %128 = arith.addf %126, %127 : vector<16x32xf32>
    %129 = arith.negf %128 : vector<16x32xf32>
    %130 = math.exp %129 : vector<16x32xf32>
    %cst_48 = arith.constant 1.000000e+00 : f32
    %131 = vector.broadcast %cst_48 : f32 to vector<16x32xf32>
    %132 = arith.addf %131, %130 : vector<16x32xf32>
    %133 = arith.divf %131, %132 : vector<16x32xf32>
    %134 = arith.mulf %128, %133 : vector<16x32xf32>
    %135 = tpu.concatenate %134, %114 in 1 : vector<16x32xf32>, vector<16x96xf32> -> vector<16x128xf32>
    %c0_49 = arith.constant 0 : index
    %c0_50 = arith.constant 0 : index
    %136 = vector.load %arg10[%c0_49, %c0_50] : memref<128x4xbf16, #tpu.memory_space<vmem>>, vector<128x4xbf16>
    %137 = arith.truncf %135 : vector<16x128xf32> to vector<16x128xbf16>
    %cst_51 = arith.constant dense<0.000000e+00> : vector<16x4xf32>
    %138 = tpu.matmul %137, %136, %cst_51 {dimension_numbers = #tpu.dot_dimension_numbers<[1], [0], [0], [1], [0, 0, 1, 1], [], []>} : vector<16x128xbf16>, vector<128x4xbf16>, vector<16x4xf32> -> vector<16x4xf32>
    %139 = vector.broadcast %6 : vector<1x4xf32> to vector<16x4xf32>
    %140 = arith.addf %138, %139 : vector<16x4xf32>
    %c0_52 = arith.constant 0 : index
    %c0_53 = arith.constant 0 : index
    %c0_54 = arith.constant 0 : index
    %141 = vector.load %arg12[%c0_52, %c0_53, %c0_54] : memref<1x16x4xf32, #tpu.memory_space<vmem>>, vector<1x16x4xf32>
    %142 = vector.shape_cast %141 : vector<1x16x4xf32> to vector<16x4xf32>
    %143 = vector.shape_cast %140 : vector<16x4xf32> to vector<1x16x4xf32>
    tpu.vector_store %arg12[%c0_52, %c0_53, %c0_54], %143 {strides = array<i32>} : memref<1x16x4xf32, #tpu.memory_space<vmem>>, vector<1x16x4xf32>,
    return
  }
  func.func @transform_0(%arg0: i32) -> (i32, i32, i32) {
    %c0_i32 = arith.constant 0 : i32
    %c0_i32_0 = arith.constant 0 : i32
    %c0_i32_1 = arith.constant 0 : i32
    return %arg0, %c0_i32, %c0_i32_0 : i32, i32, i32
  }
  func.func @transform_1(%arg0: i32) -> (i32, i32, i32) {
    %c0_i32 = arith.constant 0 : i32
    %c0_i32_0 = arith.constant 0 : i32
    %c0_i32_1 = arith.constant 0 : i32
    return %arg0, %c0_i32, %c0_i32_0 : i32, i32, i32
  }
  func.func @transform_2(%arg0: i32) -> (i32, i32, i32) {
    %c0_i32 = arith.constant 0 : i32
    %c0_i32_0 = arith.constant 0 : i32
    %c0_i32_1 = arith.constant 0 : i32
    return %arg0, %c0_i32, %c0_i32_0 : i32, i32, i32
  }
  func.func @transform_3(%arg0: i32) -> (i32, i32, i32) {
    %c0_i32 = arith.constant 0 : i32
    %c0_i32_0 = arith.constant 0 : i32
    %c0_i32_1 = arith.constant 0 : i32
    return %arg0, %c0_i32, %c0_i32_0 : i32, i32, i32
  }
  func.func @transform_4(%arg0: i32) -> (i32, i32, i32) {
    %c0_i32 = arith.constant 0 : i32
    %c0_i32_0 = arith.constant 0 : i32
    %c0_i32_1 = arith.constant 0 : i32
    return %arg0, %c0_i32, %c0_i32_0 : i32, i32, i32
  }
  func.func @transform_5(%arg0: i32) -> (i32, i32) {
    %c0_i32 = arith.constant 0 : i32
    %c0_i32_0 = arith.constant 0 : i32
    %c0_i32_1 = arith.constant 0 : i32
    return %c0_i32, %c0_i32_0 : i32, i32
  }
  func.func @transform_6(%arg0: i32) -> (i32, i32) {
    %c0_i32 = arith.constant 0 : i32
    %c0_i32_0 = arith.constant 0 : i32
    %c0_i32_1 = arith.constant 0 : i32
    return %c0_i32, %c0_i32_0 : i32, i32
  }
  func.func @transform_7(%arg0: i32) -> (i32, i32) {
    %c0_i32 = arith.constant 0 : i32
    %c0_i32_0 = arith.constant 0 : i32
    %c0_i32_1 = arith.constant 0 : i32
    return %c0_i32, %c0_i32_0 : i32, i32
  }
  func.func @transform_8(%arg0: i32) -> (i32, i32) {
    %c0_i32 = arith.constant 0 : i32
    %c0_i32_0 = arith.constant 0 : i32
    %c0_i32_1 = arith.constant 0 : i32
    return %c0_i32, %c0_i32_0 : i32, i32
  }
  func.func @transform_9(%arg0: i32) -> (i32, i32) {
    %c0_i32 = arith.constant 0 : i32
    %c0_i32_0 = arith.constant 0 : i32
    %c0_i32_1 = arith.constant 0 : i32
    return %c0_i32, %c0_i32_0 : i32, i32
  }
  func.func @transform_10(%arg0: i32) -> (i32, i32) {
    %c0_i32 = arith.constant 0 : i32
    %c0_i32_0 = arith.constant 0 : i32
    %c0_i32_1 = arith.constant 0 : i32
    return %c0_i32, %c0_i32_0 : i32, i32
  }
  func.func @transform_11(%arg0: i32) -> (i32, i32, i32) {
    %c0_i32 = arith.constant 0 : i32
    %c0_i32_0 = arith.constant 0 : i32
    %c0_i32_1 = arith.constant 0 : i32
    return %arg0, %c0_i32, %c0_i32_0 : i32, i32, i32
  }
}

</mosaic_0001>

<bundles_post_ra>
// kernel: tpu_custom_call.1
= control target key start
LH: loop header
LB: loop body
LE: loop exit
PB: predicated region body
PF: predicated region fallthrough
CT: control target
= control target key end

     0   :  { %s2228_s17 = smov 0   ;;  %s2583_s0 = inlined_call_operand.vmem [shape: bf16[2,16,5], index: 0, kind: input, shape index: {}]   ;;  %s2584_s1 = inlined_call_operand.vmem [shape: bf16[2,32,16], index: 1, kind: input, shape index: {}]   ;;  %s2585_s2 = inlined_call_operand.vmem [shape: bf16[2,16,32], index: 2, kind: input, shape index: {}]   ;;  %s2586_s3 = inlined_call_operand.vmem [shape: bf16[2,32,16], index: 3, kind: input, shape index: {}]   ;;  %s2587_s4 = inlined_call_operand.vmem [shape: f32[2,32,3], index: 4, kind: input, shape index: {}]   ;;  %s2588_s5 = inlined_call_operand.vmem [shape: bf16[5,32], index: 5, kind: input, shape index: {}]   ;;  %s2589_s6 = inlined_call_operand.vmem [shape: bf16[16,32], index: 6, kind: input, shape index: {}]   ;;  %s2590_s7 = inlined_call_operand.vmem [shape: bf16[128,128], index: 7, kind: input, shape index: {}]   ;;  %s2591_s8 = inlined_call_operand.vmem [shape: bf16[96,32], index: 8, kind: input, shape index: {}]   ;;  %s2592_s9 = inlined_call_operand.vmem [shape: bf16[128,4], index: 9, kind: input, shape index: {}]   ;;  %s2593_s10 = inlined_call_operand.vmem [shape: f32[8,32], index: 10, kind: input, shape index: {}]   ;;  %s2594_s11 = inlined_call_operand.vmem [shape: f32[2,16,4], index: 11, kind: output, shape index: {}]  }
   0x1 LB: > { %s1748_s18 = sadd.s32 4294967295, %s2155_s17   ;;  %p1752_p0 = scmp.ge.s32.totalorder %s2155_s17, 1  ;;  %s2155_s17 = sphi %s2228_s17, %s21_s17  }
   0x2   : > { %p377_p1 = scmp.lt.s32.totalorder %s2155_s17, 3 }
   0x4   : > { %p378_p2 = pnand %p1752_p0, %p377_p1 }
   0x5   : > { %v481_v0 = vld [vmem:[%s2588_s5] sm:$0x7] (!%p378_p2)  ;;  %vm491_vm0 = vcmask (!%p378_p2), 1041408   ;;  %vm492_vm1 = vcmask (!%p378_p2), 1042432   ;;  %v2157_v1 = vmov (!%p378_p2), 0.0   ;;  %v2158_v2 = vmov (!%p378_p2), 65535  }
   0x6   : > { %381 = sbr.rel (%p378_p2) target bundleno = 2287 (0x8ef), region = 64  ;;  %1880 = vmatprep.subr.bf16.mxu0 (!%p378_p2), %v2157_v1  ;;  %v493_v3 = vsel (!%p378_p2), %vm491_vm0, 4294967295, %v2158_v2  ;;  %p437_p3 = scmp.lt.s32.totalorder (!%p378_p2), %s1748_s18, 1  ;;  %vm2159_vm2 = vmmov (!%p378_p2), 0   ;;  %v2033_v5 = vld [vmem:[%s2589_s6] sm:$0xff] (!%p378_p2)   ;;  %vm487_vm3 = vcmask (!%p378_p2), 39936  }
   0x7   : > { %v494_v4 = vsel (!%p378_p2), %vm492_vm1, %v493_v3, 0  ;;  %1882 = vmatprep.mubr.msk.bf16.mxu0 (!%p378_p2), %vm2159_vm2, %v2157_v1  ;;  %vm565_vm4 = vcmask (!%p378_p2), 130048   ;;  %v2160_v7 = vmov (!%p378_p2), 1   ;;  %v2161_v8 = vmov (!%p378_p2), 0   ;;  %v1767_v21 = vld [vmem:[%s2593_s10] ss:$0 sm:$0xff] (!%p378_p2) }
   0x8   : > { %v496_v6 = vand.u32 (!%p378_p2), %v494_v4, %v481_v0  ;;  %1994 = vset.pattern.permute.xlu1 (!%p378_p2), %v2160_v7  ;;  %1993 = vset.pattern.permute.xlu0 (!%p378_p2), %v2161_v8  ;;  %v2162_v15 = vmov (!%p378_p2), 2   ;;  %s2163_s22 = smov (!%p378_p2), 64   ;;  %s2165_s25 = smov (!%p378_p2), 96   ;;  %vm761_vm5 = vcmask (!%p378_p2), 261120   ;;  %vm766_vm6 = vcmask (!%p378_p2), 523264  }
   0x9   : > { %s2166_s26 = smov (!%p378_p2), 127   ;;  %vm771_vm7 = vcmask (!%p378_p2), 785408   ;;  %vm1642_vm0 = vcmask (!%p378_p2), 31744  }
   0xa   : > { %1881 = vmatpush3.bf16.msra.mxu0 (!%p378_p2), %v496_v6 }
   0xb   : > { %1886 = vmatprep.subr.bf16.mxu0 (!%p378_p2), %v2033_v5 }
   0xd   : > { %s2596_s18 = smov (!%p437_p3, %s1748_s18), 1 }
   0xe   : > { %s1833_s23 = sshll.u32 %s2596_s18, 3  ;;  %s2245_s24 = sshll.u32 %s2596_s18, 4 }
   0xf   : > { %s441_s27 = scalar_lea.vmem %s2583_s0, %s1833_s23  ;;  %s2253_s30 = scalar_lea.vmem %s2585_s2, %s1833_s23 }
  0x10   : > { %v2032_v9 = vld [vmem:[%s441_s27] sm:$0xff]   ;;  %s456_s14 = scalar_lea.vmem %s2586_s3, %s2245_s24  ;;  %s1837_s15 = sshll.u32 %s2596_s18, 5 }
  0x11   : > { %s461_s20 = scalar_lea.vmem %s2587_s4, %s1837_s15  ;;  %1883 = vmatmul.mubr.msk.bf16.vlgmr.msra.gmra.mrb[0].mxu0 %vm487_vm3, %v2032_v9  ;;  %v2034_v10 = vld [vmem:[%s456_s14] sm:$0xff]   ;;  %v2035_v12 = vld [vmem:[%s456_s14 + $0x8] sm:$0xff]   ;;  %s2164_s23 = smov 32  }
  0x12   : > { %1887 = vmatpush3.bf16.msra.mxu0 %v2033_v5  ;;  %v2263_v11 = vld [vmem:[%s461_s20] sm:$0xff]  ;;  %1888 = vmatprep.mubr.msk.bf16.mxu0 %vm565_vm4, %v2034_v10  ;;  %v2267_v13 = vld [vmem:[%s461_s20 + $0x8] sm:$0xff]  ;;  %v2272_v14 = vld [vmem:[%s461_s20 + $0x18] sm:$0xff]  ;;  %s2167_s27 = smov 126  }
  0x13   : > { %674 = vperm.xlu1 %1994, %v2263_v11   ;;  %651 = vperm.xlu0 %1993, %v2263_v11   ;;  %v2279_v16 = vld [vmem:[%s461_s20 + $0x10] sm:$0xff] }
  0x14   : > { %1892 = vmatprep.subr.bf16.mxu0 %v2157_v1 }
  0x17   : > { %678 = vperm.xlu1 %1994, %v2267_v13   ;;  %656 = vperm.xlu0 %1993, %v2267_v13  }
  0x19   : > { %1889 = vmatmul.mubr.msk.bf16.vlgmr.msra.gmra.mrb[4].mxu0 %vm565_vm4, %v2035_v12 }
  0x1a   : > { %1896 = vmatprep.mubr.msk.bf16.mxu0 %vm2159_vm2, %v2157_v1 }
  0x1b   : > { %1995 = vset.pattern.permute.xlu1 %v2162_v15  ;;  %666 = vperm.xlu0 %1993, %v2272_v14  }
  0x1c   : > { %698 = vperm.xlu1 %1995, %v2267_v13  }
  0x1f   : > { %1997 = vset.pattern.permute.xlu0 %v2162_v15 }
  0x20   : > { %1996 = vset.pattern.permute.xlu1 %v2161_v8  ;;  %694 = vperm.xlu0 %1997, %v2263_v11  }
  0x21   : > { %661 = vperm.xlu1 %1996, %v2279_v16  }
  0x24   : > { %702 = vperm.xlu0 %1997, %v2279_v16  }
  0x25   : > { %1998 = vset.pattern.permute.xlu1 %v2160_v7 }
  0x26   : > { %682 = vperm.xlu1 %1998, %v2279_v16  }
  0x28   : > { %2031 = vset.pattern.permute.xlu0 %v2161_v8 }
  0x2a   : > { %686 = vperm.xlu1 %1998, %v2272_v14  }
  0x2e   : > { %1999 = vset.pattern.permute.xlu1 %v2162_v15 }
  0x2f   : > { %706 = vperm.xlu1 %1999, %v2272_v14  }
  0x33   : > { %2030 = vset.pattern.permute.xlu1 %v2161_v8 }
  0x92   : > { %v675_v25 = vpop.permute.xlu1 %674  ;;  %v652_v38 = vpop.permute.xlu0 %651 }
  0x96   : > { %v679_v35 = vpop.permute.xlu1 %678  ;;  %v657_v47 = vpop.permute.xlu0 %656 }
  0x9a   : > { %v667_v49 = vpop.permute.xlu0 %666 }
  0x9b   : > { %v699_v36 = vpop.permute.xlu1 %698 }
  0x9f   : > { %v695_v59 = vpop.permute.xlu0 %694 }
  0xa0   : > { %v662_v46 = vpop.permute.xlu1 %661 }
  0xa3   : > { %v703_v8 = vpop.permute.xlu0 %702 }
  0xa5   : > { %v683_v48 = vpop.permute.xlu1 %682 }
  0xa9   : > { %v687_v55 = vpop.permute.xlu1 %686 }
  0xae   : > { %v707_v5 = vpop.permute.xlu1 %706 }
  0xe4   : > { %v2288_v17 = vpop.f32.mrb[0].mxu0 }
  0xe5   : > { %v1884_v18 = vpop.f32.mrb[1].mxu0 }
  0xe6   : > { %v2290_v19 = vpop.f32.mrb[2].mxu0 }
  0xe7   : > { %v1885_v20 = vpop.f32.mrb[3].mxu0 }
  0xec   : > { %v1890_v22 = vpop.f32.mrb[4].mxu0 }
  0xed   : > { %v615_v23 = vadd.f32 %v1890_v22, %v1767_v21  ;;  %v606_v24 = vpop.f32.mrb[5].mxu0 }
  0xee   : > { %v607_v26 = vadd.f32 %v1767_v21, %v606_v24  ;;  %v1891_v27 = vpop.f32.mrb[6].mxu0  ;;  %v834_v24 = vmul.f32 %v2267_v13, %v2267_v13 }
  0xef   : > { %v1775_v28 = vmul.f32 -1.442695, %v615_v23  ;;  %v618_v29 = vadd.f32 %v1891_v27, %v1767_v21  ;;  %v609_v30 = vpop.f32.mrb[7].mxu0 }
  0xf0   : > { %v1773_v31 = vmul.f32 -1.442695, %v607_v26  ;;  %v610_v32 = vadd.f32 %v1767_v21, %v609_v30 }
  0xf1   : > { %2061 = vpow2.f32 %v1775_v28  ;;  %v1776_v33 = vmul.f32 -1.442695, %v618_v29 }
  0xf2   : > { %2063 = vpow2.f32 %v1773_v31  ;;  %v1774_v34 = vmul.f32 -1.442695, %v610_v32 }
  0xf3   : > { %2065 = vpow2.f32 %v1776_v33 }
  0xf4   : > { %2067 = vpow2.f32 %v1774_v34 }
  0xfb   : > { %v2062_v37 = vpop.eup %2061 }
  0xfc   : > { %v2064_v39 = vpop.eup %2063  ;;  %v635_v40 = vadd.f32 1.0, %v2062_v37 }
  0xfd   : > { %v2066_v41 = vpop.eup %2065  ;;  %v633_v42 = vadd.f32 1.0, %v2064_v39 }
  0xfe   : > { %v2068_v43 = vpop.eup %2067  ;;  %2069 = vrcp.f32 %v635_v40  ;;  %v636_v44 = vadd.f32 1.0, %v2066_v41 }
  0xff   : > { %2071 = vrcp.f32 %v633_v42  ;;  %v634_v45 = vadd.f32 1.0, %v2068_v43 }
 0x100   : > { %2073 = vrcp.f32 %v636_v44 }
 0x101   : > { %2075 = vrcp.f32 %v634_v45 }
 0x108   : > { %v2070_v50 = vpop.eup %2069 }
 0x109   : > { %v2072_v51 = vpop.eup %2071  ;;  %v2301_v58 = vmul.f32 %v2070_v50, %v615_v23  ;;  %v833_v23 = vmul.f32 %v2263_v11, %v2263_v11 }
 0x10a   : > { %v2074_v52 = vpop.eup %2073  ;;  %v2295_v53 = vmul.f32 %v2072_v51, %v607_v26  ;;  %v836_v26 = vmul.f32 %v2272_v14, %v2272_v14 }
 0x10b   : > { %v2076_v54 = vpop.eup %2075  ;;  %v2297_v56 = vmul.f32 %v2074_v52, %v618_v29  ;;  %v671_v6 = vmul.f32 %v662_v46, %v2301_v58  ;;  %v691_v18 = vmul.f32 %v683_v48, %v2301_v58  ;;  %v711_v20 = vmul.f32 %v703_v8, %v2301_v58 }
 0x10c   : > { %v2299_v57 = vmul.f32 %v2076_v54, %v610_v32  ;;  %v689_v60 = vmul.f32 %v675_v25, %v2295_v53  ;;  %v669_v62 = vmul.f32 %v652_v38, %v2295_v53  ;;  %v709_v7 = vmul.f32 %v695_v59, %v2295_v53  ;;  %v2343_v59 = vld [vmem:[%s2253_s30] sm:$0xff]   ;;  %s2351_s30 = scalar_lea.vmem %s2584_s1, %s2245_s24 }
 0x10d   : > { %v672_v4 = vmul.f32 %v667_v49, %v2297_v56  ;;  %v692_v12 = vmul.f32 %v687_v55, %v2297_v56  ;;  %v712_v15 = vmul.f32 %v707_v5, %v2297_v56  ;;  %v835_v25 = vmul.f32 %v2279_v16, %v2279_v16 }
 0x10e   : > { %v690_v61 = vmul.f32 %v679_v35, %v2299_v57  ;;  %v670_v63 = vmul.f32 %v657_v47, %v2299_v57  ;;  %v710_v2 = vmul.f32 %v699_v36, %v2299_v57 }
 0x10f   : > { %v2010_v9 = vpack.i.bf16 %v672_v4, %v671_v6  ;;  %v2020_v21 = vpack.i.bf16 %v692_v12, %v691_v18  ;;  %v2025_v22 = vpack.i.bf16 %v712_v15, %v711_v20  ;;  %v2037_v20 = vld [vmem:[%s2351_s30] sm:$0xff]  }
 0x110   : > { %v2005_v0 = vpack.i.bf16 %v690_v61, %v689_v60  ;;  %v2000_v3 = vpack.i.bf16 %v670_v63, %v669_v62  ;;  %v2015_v10 = vpack.i.bf16 %v710_v2, %v709_v7  ;;  %1902 = vmatprep.mubr.msk.bf16.mxu1 %vm565_vm4, %v2037_v20 }
 0x112   : > { %2006 = vrot.lane.b32.xlu0 %v2005_v0, %s2163_s22  ;;  %2001 = vrot.lane.b32.xlu1 %v2000_v3, %s2164_s23 }
 0x116   : > { %2011 = vrot.lane.b32.xlu0 %v2010_v9, %s2164_s23  ;;  %2016 = vrot.lane.b32.xlu1 %v2015_v10, %s2165_s25 }
 0x11a   : > { %2026 = vrot.lane.b32.xlu0 %v2025_v22, %s2165_s25  ;;  %2021 = vrot.lane.b32.xlu1 %v2020_v21, %s2163_s22 }
 0x11e   : > { %841 = vrot.lane.b32.xlu1 %v833_v23, %s2166_s26  ;;  %843 = vrot.lane.b32.xlu0 %v834_v24, %s2166_s26 }
 0x122   : > { %845 = vrot.lane.b32.xlu1 %v835_v25, %s2166_s26  ;;  %847 = vrot.lane.b32.xlu0 %v836_v26, %s2166_s26  ;;  %s466_s26 = scalar_lea.vmem %s2594_s11, %s2245_s24 }
 0x126   : > { %857 = vrot.lane.b32.xlu1 %v833_v23, %s2167_s27  ;;  %859 = vrot.lane.b32.xlu0 %v834_v24, %s2167_s27 }
 0x12a   : > { %861 = vrot.lane.b32.xlu1 %v835_v25, %s2167_s27  ;;  %863 = vrot.lane.b32.xlu0 %v836_v26, %s2167_s27 }
 0x184   : > { %v2007_v11 = vpop.permute.xlu0 %2006  ;;  %v2002_v27 = vpop.permute.xlu1 %2001 }
 0x185   : > { %v2004_v28 = vunpack.i.h.bf16 %v2002_v27  ;;  %v2003_v13 = vunpack.i.l.bf16 %v2002_v27  ;;  %v2009_v29 = vunpack.i.h.bf16 %v2007_v11  ;;  %v2008_v30 = vunpack.i.l.bf16 %v2007_v11 }
 0x187   : > { %v763_v16 = vsel %vm761_vm5, 0.0, %v2004_v28  ;;  %v762_v31 = vsel %vm761_vm5, 0.0, %v2003_v13 }
 0x188   : > { %v2012_v14 = vpop.permute.xlu0 %2011  ;;  %v2017_v32 = vpop.permute.xlu1 %2016  ;;  %v768_v35 = vsel %vm766_vm6, %v763_v16, %v2009_v29  ;;  %v767_v36 = vsel %vm766_vm6, %v762_v31, %v2008_v30 }
 0x189   : > { %v2019_v33 = vunpack.i.h.bf16 %v2017_v32  ;;  %v2018_v34 = vunpack.i.l.bf16 %v2017_v32  ;;  %v2014_v37 = vunpack.i.h.bf16 %v2012_v14  ;;  %v2013_v38 = vunpack.i.l.bf16 %v2012_v14 }
 0x18b   : > { %v772_v39 = vsel %vm771_vm7, %v767_v36, %v2018_v34  ;;  %v773_v40 = vsel %vm771_vm7, %v768_v35, %v2019_v33  ;;  %v765_v48 = vsel %vm761_vm5, 0.0, %v2014_v37  ;;  %v764_v49 = vsel %vm761_vm5, 0.0, %v2013_v38 }
 0x18c   : > { %v780_v41 = vpack.c.bf16 %v773_v40, %v772_v39  ;;  %v2027_v42 = vpop.permute.xlu0 %2026  ;;  %v2022_v43 = vpop.permute.xlu1 %2021  ;;  %v776_v36 = vsel %vm761_vm5, %v2288_v17, 0.0  ;;  %v777_v40 = vsel %vm761_vm5, %v2290_v19, 0.0  ;;  %v2039_v17 = vld [vmem:[%s2591_s8] sm:$0xff]   ;;  %v2040_v19 = vld [vmem:[%s2591_s8 + $0x8] sm:$0xff]  }
 0x18d   : > { %v2029_v44 = vunpack.i.h.bf16 %v2027_v42  ;;  %v2028_v45 = vunpack.i.l.bf16 %v2027_v42  ;;  %v2024_v46 = vunpack.i.h.bf16 %v2022_v43  ;;  %v2023_v47 = vunpack.i.l.bf16 %v2022_v43 }
 0x18e   : > { %1893 = vmatpush3.bf16.msra.mxu0 %v780_v41 }
 0x18f   : > { %v770_v50 = vsel %vm766_vm6, %v765_v48, %v2024_v46  ;;  %v769_v51 = vsel %vm766_vm6, %v764_v49, %v2023_v47  ;;  %1894 = vmatprep.subr.bf16.mxu0 %v2157_v1  ;;  %v1779_v48 = vld [vmem:[%s2593_s10 + $0x1] ss:$0 sm:$0xff] }
 0x190   : > { %v774_v52 = vsel %vm771_vm7, %v769_v51, %v2028_v45  ;;  %v775_v54 = vsel %vm771_vm7, %v770_v50, %v2029_v44  ;;  %v842_v60 = vpop.permute.xlu1 %841  ;;  %v844_v62 = vpop.permute.xlu0 %843  ;;  %v2038_v45 = vld [vmem:[%s2351_s30 + $0x8] sm:$0xff]  }
 0x191   : > { %v781_v55 = vpack.c.bf16 %v775_v54, %v774_v52  ;;  %v853_v63 = vadd.f32 %v842_v60, %v833_v23  ;;  %v854_v4 = vadd.f32 %v844_v62, %v834_v24  ;;  %v1780_v54 = vld [vmem:[%s2593_s10 + $0x2] ss:$0 sm:$0xff] }
 0x193   : > { %1895 = vmatpush3.bf16.msra.mxu0 %v781_v55 }
 0x194   : > { %v846_v61 = vpop.permute.xlu1 %845  ;;  %v848_v3 = vpop.permute.xlu0 %847  ;;  %1906 = vmatprep.subr.bf16.mxu0 %v2039_v17 }
 0x195   : > { %v855_v5 = vadd.f32 %v846_v61, %v835_v25  ;;  %v856_v8 = vadd.f32 %v848_v3, %v836_v26 }
 0x196   : > { %1897 = vmatmul.mubr.msk.bf16.vlgmr.msra.gmra.mrb[8].mxu0 %vm761_vm5, %v2343_v59 }
 0x197   : > { %1907 = vmatpush3.bf16.msra.mxu0 %v2039_v17 }
 0x198   : > { %v858_v0 = vpop.permute.xlu1 %857  ;;  %v860_v6 = vpop.permute.xlu0 %859  ;;  %1908 = vmatprep.subr.bf16.mxu0 %v2040_v19 }
 0x199   : > { %v869_v2 = vadd.f32 %v858_v0, %v853_v63  ;;  %v870_v9 = vadd.f32 %v860_v6, %v854_v4 }
 0x19b   : > { %2077 = vrsqrt.f32 %v869_v2  ;;  %vm875_vm8 = vcmp.eq.f32.partialorder %v869_v2, inf  ;;  %vm877_vm9 = vcmp.eq.f32.partialorder %v869_v2, 0.0  ;;  %v878_v22 = vand.u32 2147483648, %v869_v2  ;;  %1909 = vmatpush3.bf16.msra.mxu0 %v2040_v19 }
 0x19c   : > { %v862_v7 = vpop.permute.xlu1 %861  ;;  %2079 = vrsqrt.f32 %v870_v9  ;;  %v864_v12 = vpop.permute.xlu0 %863  ;;  %vm882_vm10 = vcmp.eq.f32.partialorder %v870_v9, inf  ;;  %v885_v26 = vand.u32 2147483648, %v870_v9  ;;  %vm884_vm11 = vcmp.eq.f32.partialorder %v870_v9, 0.0  ;;  %1922 = vmatprep.subr.bf16.mxu0 %v2157_v1 }
 0x19d   : > { %v871_v10 = vadd.f32 %v862_v7, %v855_v5  ;;  %v872_v15 = vadd.f32 %v864_v12, %v856_v8 }
 0x19f   : > { %2081 = vrsqrt.f32 %v871_v10  ;;  %vm889_vm12 = vcmp.eq.f32.partialorder %v871_v10, inf  ;;  %v892_v28 = vand.u32 2147483648, %v871_v10  ;;  %vm891_vm13 = vcmp.eq.f32.partialorder %v871_v10, 0.0 }
 0x1a0   : > { %2083 = vrsqrt.f32 %v872_v15  ;;  %vm896_vm14 = vcmp.eq.f32.partialorder %v872_v15, inf  ;;  %v899_v14 = vand.u32 2147483648, %v872_v15  ;;  %vm898_vm15 = vcmp.eq.f32.partialorder %v872_v15, 0.0 }
 0x1a5   : > { %v2078_v18 = vpop.eup %2077 }
 0x1a6   : > { %v874_v21 = vmul.f32 %v2078_v18, %v869_v2  ;;  %v2080_v24 = vpop.eup %2079 }
 0x1a7   : > { %v881_v27 = vmul.f32 %v2080_v24, %v870_v9 }
 0x1a8   : > { %v876_v23 = vsel %vm875_vm8, %v869_v2, %v874_v21 }
 0x1a9   : > { %v879_v25 = vsel %vm877_vm9, %v878_v22, %v876_v23  ;;  %v2082_v11 = vpop.eup %2081  ;;  %v883_v29 = vsel %vm882_vm10, %v870_v9, %v881_v27 }
 0x1aa   : > { %903 = vperm.xlu1 %2030, %v879_v25   ;;  %v888_v13 = vmul.f32 %v2082_v11, %v871_v10  ;;  %v2084_v30 = vpop.eup %2083  ;;  %v886_v16 = vsel %vm884_vm11, %v885_v26, %v883_v29 }
 0x1ab   : > { %908 = vperm.xlu0 %2031, %v886_v16   ;;  %v895_v33 = vmul.f32 %v2084_v30, %v872_v15 }
 0x1ac   : > { %v890_v31 = vsel %vm889_vm12, %v871_v10, %v888_v13 }
 0x1ad   : > { %v893_v32 = vsel %vm891_vm13, %v892_v28, %v890_v31  ;;  %v897_v34 = vsel %vm896_vm14, %v872_v15, %v895_v33 }
 0x1ae   : > { %913 = vperm.xlu1 %2030, %v893_v32   ;;  %v900_v35 = vsel %vm898_vm15, %v899_v14, %v897_v34 }
 0x1b2   : > { %918 = vperm.xlu1 %2030, %v900_v35  }
 0x229   : > { %v904_v46 = vpop.permute.xlu1 %903 }
 0x22a   : > { %v909_v50 = vpop.permute.xlu0 %908  ;;  %v925_v52 = vmul.f32 %v1779_v48, %v904_v46 }
 0x22b   : > { %v926_v60 = vmul.f32 %v1779_v48, %v909_v50 }
 0x22c   : > { %v933_v62 = vadd.f32 %v1780_v54, %v925_v52 }
 0x22d   : > { %v914_v47 = vpop.permute.xlu1 %913  ;;  %v934_v0 = vadd.f32 %v1780_v54, %v926_v60 }
 0x22e   : > { %v927_v51 = vmul.f32 %v1779_v48, %v914_v47  ;;  %v1781_v3 = vmul.f32 -1.442695, %v933_v62 }
 0x22f   : > { %v1782_v5 = vmul.f32 -1.442695, %v934_v0 }
 0x230   : > { %v935_v61 = vadd.f32 %v1780_v54, %v927_v51 }
 0x231   : > { %v919_v49 = vpop.permute.xlu1 %918 }
 0x232   : > { %v928_v55 = vmul.f32 %v1779_v48, %v919_v49  ;;  %v1783_v2 = vmul.f32 -1.442695, %v935_v61 }
 0x234   : > { %v936_v63 = vadd.f32 %v1780_v54, %v928_v55  ;;  %2085 = vpow2.f32 %v1783_v2  ;;  %v1793_v55 = vld [vmem:[%s2593_s10 + $0x4] ss:$0 sm:$0xff] }
 0x235   : > { %2087 = vpow2.f32 %v1781_v3 }
 0x236   : > { %v1784_v4 = vmul.f32 -1.442695, %v936_v63 }
 0x238   : > { %2089 = vpow2.f32 %v1784_v4 }
 0x239   : > { %2091 = vpow2.f32 %v1782_v5 }
 0x23e   : > { %v2086_v6 = vpop.eup %2085 }
 0x23f   : > { %v2088_v7 = vpop.eup %2087  ;;  %v951_v10 = vadd.f32 1.0, %v2086_v6 }
 0x240   : > { %v949_v12 = vadd.f32 1.0, %v2088_v7 }
 0x241   : > { %2093 = vrcp.f32 %v951_v10 }
 0x242   : > { %v2090_v8 = vpop.eup %2089  ;;  %2095 = vrcp.f32 %v949_v12 }
 0x243   : > { %v2092_v9 = vpop.eup %2091  ;;  %v952_v15 = vadd.f32 1.0, %v2090_v8 }
 0x244   : > { %v950_v18 = vadd.f32 1.0, %v2092_v9 }
 0x245   : > { %2097 = vrcp.f32 %v952_v15 }
 0x246   : > { %2099 = vrcp.f32 %v950_v18 }
 0x24b   : > { %v2094_v20 = vpop.eup %2093 }
 0x24c   : > { %v2096_v21 = vpop.eup %2095  ;;  %v963_v25 = vmul.f32 %v2094_v20, %v935_v61 }
 0x24d   : > { %v961_v27 = vmul.f32 %v2096_v21, %v933_v62 }
 0x24f   : > { %v2098_v22 = vpop.eup %2097 }
 0x250   : > { %v2100_v24 = vpop.eup %2099  ;;  %v964_v29 = vmul.f32 %v2098_v22, %v936_v63 }
 0x251   : > { %v962_v14 = vmul.f32 %v2100_v24, %v934_v0 }
 0x269   : > { %v824_v37 = vpop.f32.mrb[8].mxu0 }
 0x26a   : > { %v2357_v38 = vadd.f32 %v824_v37, %v776_v36  ;;  %v1898_v39 = vpop.f32.mrb[9].mxu0 }
 0x26b   : > { %v827_v41 = vpop.f32.mrb[10].mxu0 }
 0x26c   : > { %v2361_v42 = vadd.f32 %v827_v41, %v777_v40  ;;  %v1899_v43 = vpop.f32.mrb[11].mxu0 }
 0x26e   : > { %v969_v44 = vpack.c.bf16 %v2361_v42, %v2357_v38 }
 0x270   : > { %1900 = vmatprep.subr.bf16.mxu1 %v969_v44 }
 0x271   : > { %1901 = vmatpush3.bf16.msra.mxu1 %v969_v44 }
 0x272   : > { %1914 = vmatprep.subr.bf16.mxu1 %v2157_v1 }
 0x274   : > { %1903 = vmatmul.mubr.msk.bf16.vlgmr.msra.gmra.mrb[0].mxu1 %vm565_vm4, %v2038_v45 }
 0x275   : > { %1918 = vmatprep.mubr.msk.bf16.mxu1 %vm2159_vm2, %v2157_v1 }
 0x347   : > { %v2383_v23 = vpop.f32.mrb[0].mxu1 }
 0x348   : > { %v1037_v26 = vmul.f32 %v2383_v23, %v2301_v58  ;;  %v2387_v11 = vpop.f32.mrb[1].mxu1 }
 0x349   : > { %v1035_v28 = vmul.f32 %v2387_v11, %v2295_v53  ;;  %v2391_v13 = vpop.f32.mrb[2].mxu1 }
 0x34a   : > { %v1041_v30 = vmul.f32 %v1037_v26, %v963_v25  ;;  %v1038_v16 = vmul.f32 %v2391_v13, %v2297_v56  ;;  %v2395_v31 = vpop.f32.mrb[3].mxu1 }
 0x34b   : > { %v1039_v32 = vmul.f32 %v1035_v28, %v961_v27  ;;  %v1036_v58 = vmul.f32 %v2395_v31, %v2299_v57 }
 0x34c   : > { %v1791_v33 = vmul.f32 -1.442695, %v1041_v30  ;;  %v1042_v34 = vmul.f32 %v1038_v16, %v964_v29 }
 0x34d   : > { %v1789_v35 = vmul.f32 -1.442695, %v1039_v32  ;;  %v1040_v36 = vmul.f32 %v1036_v58, %v962_v14  ;;  %v2041_v14 = vld [vmem:[%s2590_s7] sm:$0xff]   ;;  %v2043_v58 = vld [vmem:[%s2590_s7 + $0x10] sm:$0xff]  }
 0x34e   : > { %2101 = vpow2.f32 %v1791_v33  ;;  %v1792_v53 = vmul.f32 -1.442695, %v1042_v34  ;;  %v2044_v33 = vld [vmem:[%s2590_s7 + $0x18] sm:$0xff]  }
 0x34f   : > { %2103 = vpow2.f32 %v1789_v35  ;;  %v1790_v37 = vmul.f32 -1.442695, %v1040_v36  ;;  %v2046_v35 = vld [vmem:[%s2590_s7 + $0x28] sm:$0xff]  }
 0x350   : > { %2105 = vpow2.f32 %v1792_v53 }
 0x351   : > { %2107 = vpow2.f32 %v1790_v37 }
 0x358   : > { %v2102_v39 = vpop.eup %2101 }
 0x359   : > { %v2104_v40 = vpop.eup %2103  ;;  %v1057_v56 = vadd.f32 1.0, %v2102_v39 }
 0x35a   : > { %v2106_v41 = vpop.eup %2105  ;;  %v1055_v43 = vadd.f32 1.0, %v2104_v40 }
 0x35b   : > { %v2108_v44 = vpop.eup %2107  ;;  %2109 = vrcp.f32 %v1057_v56  ;;  %v1058_v45 = vadd.f32 1.0, %v2106_v41 }
 0x35c   : > { %2111 = vrcp.f32 %v1055_v43  ;;  %v1056_v57 = vadd.f32 1.0, %v2108_v44 }
 0x35d   : > { %2113 = vrcp.f32 %v1058_v45 }
 0x35e   : > { %2115 = vrcp.f32 %v1056_v57 }
 0x365   : > { %v2110_v17 = vpop.eup %2109 }
 0x366   : > { %v2112_v19 = vpop.eup %2111  ;;  %v2405_v51 = vmul.f32 %v2110_v17, %v1041_v30 }
 0x367   : > { %v2114_v46 = vpop.eup %2113  ;;  %v2401_v49 = vmul.f32 %v2112_v19, %v1039_v32  ;;  %v2042_v32 = vld [vmem:[%s2590_s7 + $0x8] sm:$0xff]  }
 0x368   : > { %v2116_v47 = vpop.eup %2115  ;;  %v2399_v48 = vmul.f32 %v2114_v46, %v1042_v34  ;;  %v2045_v34 = vld [vmem:[%s2590_s7 + $0x20] sm:$0xff]  }
 0x369   : > { %v2403_v50 = vmul.f32 %v2116_v47, %v1040_v36  ;;  %v2047_v36 = vld [vmem:[%s2590_s7 + $0x30] sm:$0xff]  }
 0x36a   : > { %v1076_v54 = vpack.c.bf16 %v2399_v48, %v2405_v51 }
 0x36b   : > { %v1075_v52 = vpack.c.bf16 %v2403_v50, %v2401_v49 }
 0x36d   : > { %1910 = vmatprep.mubr.msk.bf16.mxu0 %vm761_vm5, %v1075_v52 }
 0x36e   : > { %1911 = vmatmul.mubr.msk.bf16.vlgmr.msra.gmra.mrb[12].mxu0 %vm761_vm5, %v1076_v54 }
 0x36f   : > { %1938 = vmatprep.mubr.msk.bf16.mxu0 %vm2159_vm2, %v2157_v1  ;;  %1923 = vmatpush3.bf16.msra.mxu0 %v2041_v14 }
 0x370   : > { %1924 = vmatprep.subr.bf16.mxu0 %v2157_v1 }
 0x373   : > { %1925 = vmatpush3.bf16.msra.mxu0 %v2042_v32 }
 0x374   : > { %1926 = vmatprep.subr.bf16.mxu0 %v2157_v1 }
 0x377   : > { %1927 = vmatpush3.bf16.msra.mxu0 %v2043_v58  ;;  %v1811_v58 = vld [vmem:[%s2593_s10 + $0x3] ss:$0 sm:$0xff] }
 0x378   : > { %1928 = vmatprep.subr.bf16.mxu0 %v2157_v1 }
 0x37b   : > { %1929 = vmatpush3.bf16.msra.mxu0 %v2044_v33 }
 0x37c   : > { %1930 = vmatprep.subr.bf16.mxu0 %v2157_v1 }
 0x37f   : > { %1931 = vmatpush3.bf16.msra.mxu0 %v2045_v34 }
 0x380   : > { %1932 = vmatprep.subr.bf16.mxu0 %v2157_v1 }
 0x383   : > { %1933 = vmatpush3.bf16.msra.mxu0 %v2046_v35 }
 0x384   : > { %1934 = vmatprep.subr.bf16.mxu0 %v2157_v1 }
 0x387   : > { %1935 = vmatpush3.bf16.msra.mxu0 %v2047_v36 }
 0x388   : > { %1936 = vmatprep.subr.bf16.mxu0 %v2157_v1 }
 0x441   : > { %v1912_v60 = vpop.f32.mrb[12].mxu0 }
 0x442   : > { %v1142_v61 = vadd.f32 %v1912_v60, %v1793_v55  ;;  %v1133_v62 = vpop.f32.mrb[13].mxu0 }
 0x443   : > { %v1134_v63 = vadd.f32 %v1793_v55, %v1133_v62  ;;  %v1913_v0 = vpop.f32.mrb[14].mxu0 }
 0x444   : > { %v1800_v2 = vmul.f32 -1.442695, %v1142_v61  ;;  %v1145_v3 = vadd.f32 %v1913_v0, %v1793_v55  ;;  %v1136_v4 = vpop.f32.mrb[15].mxu0 }
 0x445   : > { %v1798_v5 = vmul.f32 -1.442695, %v1134_v63  ;;  %v1137_v6 = vadd.f32 %v1793_v55, %v1136_v4 }
 0x446   : > { %2117 = vpow2.f32 %v1800_v2  ;;  %v1801_v7 = vmul.f32 -1.442695, %v1145_v3 }
 0x447   : > { %2119 = vpow2.f32 %v1798_v5  ;;  %v1799_v8 = vmul.f32 -1.442695, %v1137_v6 }
 0x448   : > { %2121 = vpow2.f32 %v1801_v7 }
 0x449   : > { %2123 = vpow2.f32 %v1799_v8 }
 0x450   : > { %v2118_v9 = vpop.eup %2117 }
 0x451   : > { %v2120_v10 = vpop.eup %2119  ;;  %v1162_v12 = vadd.f32 1.0, %v2118_v9 }
 0x452   : > { %v2122_v15 = vpop.eup %2121  ;;  %v1160_v21 = vadd.f32 1.0, %v2120_v10 }
 0x453   : > { %2125 = vrcp.f32 %v1162_v12  ;;  %v1163_v18 = vadd.f32 1.0, %v2122_v15  ;;  %v2124_v20 = vpop.eup %2123 }
 0x454   : > { %v1161_v22 = vadd.f32 1.0, %v2124_v20 }
 0x455   : > { %2127 = vrcp.f32 %v1163_v18 }
 0x456   : > { %2129 = vrcp.f32 %v1160_v21 }
 0x457   : > { %2131 = vrcp.f32 %v1161_v22  ;;  %v2049_v22 = vld [vmem:[%s2591_s8 + $0x10] sm:$0xff]  }
 0x45d   : > { %v2126_v24 = vpop.eup %2125 }
 0x45e   : > { %v1174_v25 = vmul.f32 %v2126_v24, %v1142_v61  ;;  %v2051_v24 = vld [vmem:[%s2591_s8 + $0x20] sm:$0xff]  }
 0x45f   : > { %v2128_v26 = vpop.eup %2127 }
 0x460   : > { %v1175_v27 = vmul.f32 %v2128_v26, %v1145_v3  ;;  %1184 = vrot.lane.b32.xlu0 %v1174_v25, %s2164_s23  ;;  %v2130_v28 = vpop.eup %2129 }
 0x461   : > { %v2132_v29 = vpop.eup %2131  ;;  %v1172_v30 = vmul.f32 %v2130_v28, %v1134_v63 }
 0x462   : > { %1186 = vrot.lane.b32.xlu1 %v1175_v27, %s2164_s23  ;;  %v1173_v16 = vmul.f32 %v2132_v29, %v1137_v6 }
 0x464   : > { %1200 = vrot.lane.b32.xlu0 %v1174_v25, %s2163_s22 }
 0x466   : > { %1202 = vrot.lane.b32.xlu1 %v1175_v27, %s2163_s22 }
 0x468   : > { %1180 = vrot.lane.b32.xlu0 %v1172_v30, %s2164_s23 }
 0x46a   : > { %1182 = vrot.lane.b32.xlu1 %v1173_v16, %s2164_s23 }
 0x46c   : > { %1196 = vrot.lane.b32.xlu0 %v1172_v30, %s2163_s22 }
 0x46e   : > { %1198 = vrot.lane.b32.xlu1 %v1173_v16, %s2163_s22 }
 0x470   : > { %1212 = vrot.lane.b32.xlu0 %v1172_v30, %s2165_s25 }
 0x472   : > { %1214 = vrot.lane.b32.xlu1 %v1173_v16, %s2165_s25 }
 0x474   : > { %1216 = vrot.lane.b32.xlu0 %v1174_v25, %s2165_s25  ;;  %v2052_v25 = vld [vmem:[%s2591_s8 + $0x28] sm:$0xff]  }
 0x476   : > { %1218 = vrot.lane.b32.xlu1 %v1175_v27, %s2165_s25 }
 0x4d2   : > { %v1185_v53 = vpop.permute.xlu0 %1184 }
 0x4d3   : > { %v1194_v52 = vmul.f32 %v2383_v23, %v1185_v53 }
 0x4d4   : > { %v1187_v37 = vpop.permute.xlu1 %1186 }
 0x4d5   : > { %v1195_v55 = vmul.f32 %v2391_v13, %v1187_v37 }
 0x4d6   : > { %v1201_v39 = vpop.permute.xlu0 %1200 }
 0x4d7   : > { %v1210_v63 = vmul.f32 %v2383_v23, %v1201_v39 }
 0x4d8   : > { %v1203_v40 = vpop.permute.xlu1 %1202 }
 0x4d9   : > { %v1211_v0 = vmul.f32 %v2391_v13, %v1203_v40 }
 0x4da   : > { %v1181_v56 = vpop.permute.xlu0 %1180 }
 0x4db   : > { %v1192_v45 = vmul.f32 %v1181_v56, %v2387_v11 }
 0x4dc   : > { %v1183_v41 = vpop.permute.xlu1 %1182 }
 0x4dd   : > { %v1193_v57 = vmul.f32 %v1183_v41, %v2395_v31  ;;  %v1228_v60 = vsel %vm761_vm5, %v2401_v49, %v1192_v45 }
 0x4de   : > { %v1197_v43 = vpop.permute.xlu0 %1196 }
 0x4df   : > { %v1208_v17 = vmul.f32 %v1197_v43, %v2387_v11  ;;  %v1229_v61 = vsel %vm761_vm5, %v2403_v50, %v1193_v57  ;;  %v1231_v50 = vsel %vm761_vm5, %v2399_v48, %v1195_v55 }
 0x4e0   : > { %v1199_v44 = vpop.permute.xlu1 %1198  ;;  %v1235_v10 = vsel %vm766_vm6, %v1231_v50, %v1211_v0  ;;  %v2053_v0 = vld [vmem:[%s2592_s9] sm:$0xff]  }
 0x4e1   : > { %v1209_v19 = vmul.f32 %v1199_v44, %v2395_v31  ;;  %v1232_v2 = vsel %vm766_vm6, %v1228_v60, %v1208_v17 }
 0x4e2   : > { %v1213_v46 = vpop.permute.xlu0 %1212 }
 0x4e3   : > { %v1224_v47 = vmul.f32 %v1213_v46, %v2387_v11  ;;  %v1233_v11 = vsel %vm766_vm6, %v1229_v61, %v1209_v19 }
 0x4e4   : > { %v1215_v54 = vpop.permute.xlu1 %1214 }
 0x4e5   : > { %v1225_v62 = vmul.f32 %v1215_v54, %v2395_v31  ;;  %v1236_v4 = vsel %vm771_vm7, %v1232_v2, %v1224_v47  ;;  %v1230_v31 = vsel %vm761_vm5, %v2405_v51, %v1194_v52  ;;  %v2056_v2 = vld [vmem:[%s2592_s9 + $0x18] sm:$0xff]  }
 0x4e6   : > { %v1217_v3 = vpop.permute.xlu0 %1216  ;;  %v1234_v9 = vsel %vm766_vm6, %v1230_v31, %v1210_v63 }
 0x4e7   : > { %v1237_v5 = vsel %vm771_vm7, %v1233_v11, %v1225_v62  ;;  %v1226_v49 = vmul.f32 %v2383_v23, %v1217_v3  ;;  %v2057_v11 = vld [vmem:[%s2592_s9 + $0x20] sm:$0xff]   ;;  %v2058_v3 = vld [vmem:[%s2592_s9 + $0x28] sm:$0xff]  }
 0x4e8   : > { %v1240_v6 = vpack.c.bf16 %v1237_v5, %v1236_v4  ;;  %v1219_v7 = vpop.permute.xlu1 %1218  ;;  %v2059_v4 = vld [vmem:[%s2592_s9 + $0x30] sm:$0xff]   ;;  %v2060_v5 = vld [vmem:[%s2592_s9 + $0x38] sm:$0xff]  }
 0x4e9   : > { %v1227_v8 = vmul.f32 %v2391_v13, %v1219_v7  ;;  %v1238_v12 = vsel %vm771_vm7, %v1234_v9, %v1226_v49  ;;  %v2048_v13 = vld [vmem:[%s2590_s7 + $0x38] sm:$0xff]   ;;  %v1814_v49 = vld [vmem:[%s2593_s10 + $0x5] ss:$0 sm:$0xff] }
 0x4ea   : > { %1915 = vmatpush3.bf16.msra.mxu1 %v1240_v6  ;;  %1937 = vmatpush3.bf16.msra.mxu0 %v2048_v13 }
 0x4eb   : > { %v1239_v15 = vsel %vm771_vm7, %v1235_v10, %v1227_v8  ;;  %1916 = vmatprep.subr.bf16.mxu1 %v2157_v1 }
 0x4ec   : > { %v1241_v23 = vpack.c.bf16 %v1239_v15, %v1238_v12 }
 0x4ee   : > { %1917 = vmatpush3.bf16.msra.mxu1 %v1241_v23 }
 0x4ef   : > { %1942 = vmatprep.subr.bf16.mxu1 %v2157_v1 }
 0x4f1   : > { %1919 = vmatmul.mubr.msk.bf16.vlgmr.msra.gmra.mrb[4].mxu1 %vm761_vm5, %v2343_v59  ;;  %v2050_v59 = vld [vmem:[%s2591_s8 + $0x18] sm:$0xff]  }
 0x4f2   : > { %1950 = vmatprep.mubr.msk.bf16.mxu1 %vm2159_vm2, %v2157_v1  ;;  %1943 = vmatpush3.bf16.msra.mxu1 %v2049_v22 }
 0x4f3   : > { %1944 = vmatprep.subr.bf16.mxu1 %v2157_v1 }
 0x4f6   : > { %1945 = vmatpush3.bf16.msra.mxu1 %v2050_v59 }
 0x4f7   : > { %1946 = vmatprep.subr.bf16.mxu1 %v2157_v1 }
 0x4fa   : > { %1947 = vmatpush3.bf16.msra.mxu1 %v2051_v24  ;;  %v1822_v24 = vld [vmem:[%s2593_s10 + $0x6] ss:$0 sm:$0xff] }
 0x4fb   : > { %1948 = vmatprep.subr.bf16.mxu1 %v2157_v1 }
 0x4fe   : > { %1949 = vmatpush3.bf16.msra.mxu1 %v2052_v25 }
 0x4ff   : > { %1954 = vmatprep.subr.bf16.mxu1 %v2157_v1 }
 0x5c4   : > { %v1276_v48 = vpop.f32.mrb[4].mxu1 }
 0x5c5   : > { %v1920_v51 = vpop.f32.mrb[5].mxu1 }
 0x5c6   : > { %v1279_v18 = vpop.f32.mrb[6].mxu1 }
 0x5c7   : > { %v1299_v20 = vpack.c.bf16 %v1279_v18, %v1276_v48  ;;  %v1921_v21 = vpop.f32.mrb[7].mxu1 }
 0x5c9   : > { %1939 = vmatmul.mubr.bf16.vlgmr.msra.gmra.mrb[16].mxu0 %v1299_v20 }
 0x69c   : > { %v1382_v26 = vpop.f32.mrb[16].mxu0 }
 0x69d   : > { %v2511_v27 = vadd.f32 %v1382_v26, %v2357_v38  ;;  %v1940_v28 = vpop.f32.mrb[17].mxu0  ;;  %v1393_v33 = vadd.f32 %v1811_v58, %v1382_v26 }
 0x69e   : > { %v1385_v29 = vpop.f32.mrb[18].mxu0 }
 0x69f   : > { %v1413_v30 = vmul.f32 %v2511_v27, %v2511_v27  ;;  %v2517_v16 = vadd.f32 %v1385_v29, %v2361_v42  ;;  %v1941_v14 = vpop.f32.mrb[19].mxu0  ;;  %v1394_v34 = vadd.f32 %v1811_v58, %v1385_v29  ;;  %v1812_v35 = vmul.f32 -1.442695, %v1393_v33 }
 0x6a1   : > { %v1414_v32 = vmul.f32 %v2517_v16, %v2517_v16  ;;  %1417 = vrot.lane.b32.xlu0 %v1413_v30, %s2165_s25  ;;  %v1813_v36 = vmul.f32 -1.442695, %v1394_v34  ;;  %2133 = vpow2.f32 %v1812_v35 }
 0x6a3   : > { %1419 = vrot.lane.b32.xlu1 %v1414_v32, %s2165_s25  ;;  %2135 = vpow2.f32 %v1813_v36 }
 0x6a5   : > { %1425 = vrot.lane.b32.xlu0 %v1413_v30, %s2163_s22 }
 0x6a7   : > { %1427 = vrot.lane.b32.xlu1 %v1414_v32, %s2163_s22 }
 0x6ab   : > { %v2134_v53 = vpop.eup %2133 }
 0x6ac   : > { %v1401_v39 = vadd.f32 1.0, %v2134_v53 }
 0x6ad   : > { %v2136_v37 = vpop.eup %2135 }
 0x6ae   : > { %v1402_v40 = vadd.f32 1.0, %v2136_v37  ;;  %2137 = vrcp.f32 %v1401_v39 }
 0x6b0   : > { %2139 = vrcp.f32 %v1402_v40 }
 0x6b8   : > { %v2138_v56 = vpop.eup %2137 }
 0x6b9   : > { %v1407_v45 = vmul.f32 %v2138_v56, %v1393_v33 }
 0x6ba   : > { %v2140_v41 = vpop.eup %2139 }
 0x6bb   : > { %v1408_v57 = vmul.f32 %v2140_v41, %v1394_v34  ;;  %v1409_v54 = vadd.f32 %v1407_v45, %v2357_v38  ;;  %v2054_v38 = vld [vmem:[%s2592_s9 + $0x8] sm:$0xff]  }
 0x6bd   : > { %v1410_v55 = vadd.f32 %v1408_v57, %v2361_v42  ;;  %v2055_v42 = vld [vmem:[%s2592_s9 + $0x10] sm:$0xff]  }
 0x713   : > { %v1418_v43 = vpop.permute.xlu0 %1417 }
 0x714   : > { %v1423_v17 = vadd.f32 %v1418_v43, %v1413_v30 }
 0x715   : > { %v1420_v44 = vpop.permute.xlu1 %1419 }
 0x716   : > { %v1424_v46 = vadd.f32 %v1420_v44, %v1414_v32 }
 0x717   : > { %v1426_v19 = vpop.permute.xlu0 %1425 }
 0x718   : > { %v1431_v47 = vadd.f32 %v1426_v19, %v1423_v17 }
 0x719   : > { %v1428_v52 = vpop.permute.xlu1 %1427 }
 0x71a   : > { %v1432_v60 = vadd.f32 %v1428_v52, %v1424_v46  ;;  %v1433_v61 = vsel %vm761_vm5, %v1409_v54, %v1431_v47 }
 0x71c   : > { %v1434_v62 = vsel %vm761_vm5, %v1410_v55, %v1432_v60 }
 0x71d   : > { %v1443_v63 = vpack.c.bf16 %v1434_v62, %v1433_v61 }
 0x71f   : > { %1951 = vmatmul.mubr.msk.bf16.vlgmr.msra.gmra.mrb[8].mxu1 %vm766_vm6, %v1443_v63 }
 0x720   : > { %1970 = vmatprep.mubr.msk.bf16.mxu1 %vm2159_vm2, %v2157_v1  ;;  %1955 = vmatpush3.bf16.msra.mxu1 %v2053_v0 }
 0x721   : > { %1956 = vmatprep.subr.bf16.mxu1 %v2157_v1 }
 0x724   : > { %1957 = vmatpush3.bf16.msra.mxu1 %v2054_v38 }
 0x725   : > { %1958 = vmatprep.subr.bf16.mxu1 %v2157_v1 }
 0x728   : > { %1959 = vmatpush3.bf16.msra.mxu1 %v2055_v42 }
 0x729   : > { %1960 = vmatprep.subr.bf16.mxu1 %v2157_v1 }
 0x72c   : > { %1961 = vmatpush3.bf16.msra.mxu1 %v2056_v2 }
 0x72d   : > { %1962 = vmatprep.subr.bf16.mxu1 %v2157_v1 }
 0x730   : > { %1963 = vmatpush3.bf16.msra.mxu1 %v2057_v11 }
 0x731   : > { %1964 = vmatprep.subr.bf16.mxu1 %v2157_v1 }
 0x734   : > { %1965 = vmatpush3.bf16.msra.mxu1 %v2058_v3 }
 0x735   : > { %1966 = vmatprep.subr.bf16.mxu1 %v2157_v1 }
 0x738   : > { %1967 = vmatpush3.bf16.msra.mxu1 %v2059_v4 }
 0x739   : > { %1968 = vmatprep.subr.bf16.mxu1 %v2157_v1 }
 0x73c   : > { %1969 = vmatpush3.bf16.msra.mxu1 %v2060_v5 }
 0x7f2   : > { %v1509_v6 = vpop.f32.mrb[8].mxu1 }
 0x7f3   : > { %v1510_v7 = vadd.f32 %v1814_v49, %v1509_v6  ;;  %v1952_v31 = vpop.f32.mrb[9].mxu1 }
 0x7f4   : > { %v1512_v50 = vpop.f32.mrb[10].mxu1 }
 0x7f5   : > { %v1820_v8 = vmul.f32 -1.442695, %v1510_v7  ;;  %v1513_v9 = vadd.f32 %v1814_v49, %v1512_v50  ;;  %v1953_v10 = vpop.f32.mrb[11].mxu1 }
 0x7f7   : > { %2141 = vpow2.f32 %v1820_v8  ;;  %v1821_v12 = vmul.f32 -1.442695, %v1513_v9 }
 0x7f9   : > { %2143 = vpow2.f32 %v1821_v12 }
 0x801   : > { %v2142_v1 = vpop.eup %2141 }
 0x802   : > { %v1522_v15 = vadd.f32 1.0, %v2142_v1 }
 0x803   : > { %v2144_v23 = vpop.eup %2143 }
 0x804   : > { %2145 = vrcp.f32 %v1522_v15  ;;  %v1523_v13 = vadd.f32 1.0, %v2144_v23 }
 0x806   : > { %2147 = vrcp.f32 %v1523_v13 }
 0x80e   : > { %v2146_v48 = vpop.eup %2145 }
 0x80f   : > { %v1528_v51 = vmul.f32 %v2146_v48, %v1510_v7 }
 0x810   : > { %v2148_v18 = vpop.eup %2147 }
 0x811   : > { %v1529_v20 = vmul.f32 %v2148_v18, %v1513_v9  ;;  %v1530_v21 = vsel %vm761_vm5, %v1528_v51, %v2511_v27 }
 0x813   : > { %v1531_v22 = vsel %vm761_vm5, %v1529_v20, %v2517_v16 }
 0x814   : > { %v1548_v59 = vpack.c.bf16 %v1531_v22, %v1530_v21 }
 0x816   : > { %1971 = vmatmul.mubr.bf16.vlgmr.msra.gmra.mrb[12].mxu1 %v1548_v59 }
 0x8e9   : > { %v1635_v25 = vpop.f32.mrb[12].mxu1 }
 0x8ea   : > { %v1636_v26 = vadd.f32 %v1822_v24, %v1635_v25  ;;  %v1972_v28 = vpop.f32.mrb[13].mxu1 }
 0x8eb   : > { %v1638_v29 = vpop.f32.mrb[14].mxu1 }
 0x8ec   : > { %1643 = vst.msk [vmem:[%s466_s26] sm:$0xff] %vm1642_vm0, %v1636_v26  ;;  %v1639_v27 = vadd.f32 %v1822_v24, %v1638_v29  ;;  %v1973_v30 = vpop.f32.mrb[15].mxu1 }
 0x8ee   : > { %1644 = vst.msk [vmem:[%s466_s26 + $0x8] sm:$0xff] %vm1642_vm0, %v1639_v27 }
 0x8ef PF: > { %s21_s17 = sadd.s32 1, %s2155_s17  }
 0x8f0   : > { %p18_p4 = scmp.ge.s32.totalorder %s21_s17, 4  }
 0x8f2   :  { %20 = sbr.rel (!%p18_p4) target bundleno = 1 (0x1), region = 106 }

</bundles_post_ra>
